<compile_context>
chip_gen: v7x
topology: tpu7x:2x2x1
jax: 0.10.0
libtpu: 0.0.40
codegen_flags: <defaults>
</compile_context>

<pallas_src>
import jax
import jax.numpy as jnp
from jax.experimental import pallas as pl
from jax.experimental.pallas import tpu as pltpu

# Fixed architecture constants from the PyTorch module.
_C1_OUT, _K1, _S1 = 32, 5, 2
_C2_OUT, _K2, _S2 = 32, 3, 2
_FC1_OUT = 256


def _round_up(a, m):
    return ((a + m - 1) // m) * m


def _conv_out_len(n, k, s):
    return (n - k) // s + 1


# --------------------------------------------------------------------------- #
# Kernel: 4 chained MXU matmuls + bias/ReLU, everything resident in VMEM.
# --------------------------------------------------------------------------- #
def _scan_encoder_kernel(x_ref, w1_ref, b1_ref, w2_ref, b2_ref,
                         g_ref, bf1_ref, wf2_ref, bf2_ref, o_ref):
    cd = w1_ref.dtype  # compute dtype of the matmul operands (f32 or bf16)

    # conv1 (banded): [tb, S] @ [S, H1p]
    h = jnp.dot(x_ref[...].astype(cd), w1_ref[...],
                preferred_element_type=jnp.float32)
    h = jnp.maximum(h + b1_ref[...], 0.0)

    # conv2 (banded): [tb, H1p] @ [H1p, H2p]
    h = jnp.dot(h.astype(cd), w2_ref[...], preferred_element_type=jnp.float32)
    h = jnp.maximum(h + b2_ref[...], 0.0)

    # fc1: [tb, H2p] @ [H2p, 256]
    h = jnp.dot(h.astype(cd), g_ref[...], preferred_element_type=jnp.float32)
    h = jnp.maximum(h + bf1_ref[...], 0.0)

    # fc2: [tb, 256] @ [256, feat]   (feat = 128 -> lane-dense store)
    h = jnp.dot(h.astype(cd), wf2_ref[...], preferred_element_type=jnp.float32)
    o_ref[...] = (h + bf2_ref[...]).astype(o_ref.dtype)


# --------------------------------------------------------------------------- #
# Wrapper
# --------------------------------------------------------------------------- #
def scan_encoder_forward(x, kp, *, row_tile=256):
    """x: [N, L, S] or [N, S]; kp: kernel-layout params. Returns [N, L, F] / [N, F]."""
    if x.ndim == 3:
        n, l, s = x.shape
        x2d = x.reshape(n * l, s)
    elif x.ndim == 2:
        n, s = x.shape
        l = None
        x2d = x
    else:
        raise ValueError("expected 2-D or 3-D input")

    r = x2d.shape[0]
    feat = kp["wf2"].shape[1]
    w_args = (kp["w1b"], kp["b1b"], kp["w2b"], kp["b2b"],
              kp["g"], kp["bf1"], kp["wf2"], kp["bf2"])

    # Row tile: multiple of 8, capped at row_tile, and <= ~half the rows so that
    # whenever possible there are >= 2 "parallel" tiles for v7x's two TensorCores.
    rt_cap = max(8, (int(row_tile) // 8) * 8)
    rt_half = _round_up(max((r + 1) // 2, 1), 8)
    rt = max(8, min(rt_cap, rt_half))
    grid = (pl.cdiv(r, rt),)

    # Advisory cost hint for XLA's scheduler.
    h1p = kp["w1b"].shape[1]
    h2p = kp["w2b"].shape[1]
    fc1 = kp["g"].shape[1]
    flops = 2 * r * (s * h1p + h1p * h2p + h2p * fc1 + fc1 * feat)
    wbytes = sum(int(a.size) * a.dtype.itemsize for a in w_args)
    ce = pl.CostEstimate(
        flops=int(flops), transcendentals=0,
        bytes_accessed=int(r * s * x2d.dtype.itemsize
                           + r * feat * x2d.dtype.itemsize + wbytes))

    w_specs = [pl.BlockSpec(a.shape, lambda i: (0, 0)) for a in w_args]
    out = pl.pallas_call(
        _scan_encoder_kernel,
        out_shape=jax.ShapeDtypeStruct((r, feat), x2d.dtype),
        grid=grid,
        in_specs=[pl.BlockSpec((rt, s), lambda i: (i, 0))] + w_specs,
        out_specs=pl.BlockSpec((rt, feat), lambda i: (i, 0)),
        compiler_params=pltpu.CompilerParams(
            dimension_semantics=("parallel",)),
        cost_estimate=ce,
    )(x2d, *w_args)

    if l is not None:
        out = out.reshape(n, l, feat)
    return out


# --------------------------------------------------------------------------- #
# Parameter construction / layout
# --------------------------------------------------------------------------- #
def init_params(key, input_shape, feature_dim):
    """PyTorch-layout parameters with PyTorch-default uniform init."""
    l1 = _conv_out_len(input_shape, _K1, _S1)
    l2 = _conv_out_len(l1, _K2, _S2)
    cnn_dim = _C2_OUT * l2
    keys = jax.random.split(key, 8)

    def u(k, shape, fan_in):
        b = 1.0 / (fan_in ** 0.5)
        return jax.random.uniform(k, shape, minval=-b, maxval=b, dtype=jnp.float32)

    return {
        "conv1_w": u(keys[0], (_C1_OUT, 1, _K1), 1 * _K1),
        "conv1_b": u(keys[1], (_C1_OUT,), 1 * _K1),
        "conv2_w": u(keys[2], (_C2_OUT, _C1_OUT, _K2), _C1_OUT * _K2),
        "conv2_b": u(keys[3], (_C2_OUT,), _C1_OUT * _K2),
        "fc1_w": u(keys[4], (_FC1_OUT, cnn_dim), cnn_dim),
        "fc1_b": u(keys[5], (_FC1_OUT,), cnn_dim),
        "fc2_w": u(keys[6], (feature_dim, _FC1_OUT), _FC1_OUT),
        "fc2_b": u(keys[7], (feature_dim,), _FC1_OUT),
    }


def build_kernel_params(pt, input_shape, *, compute_dtype=jnp.float32):
    """Rearrange PyTorch-layout weights into banded, lane-dense matmul weights.

    Intermediate layouts are position-major: h1[:, p*32 + c], h2[:, q*32 + c],
    padded in the lane dim to multiples of 128 (zero bands / zero bias / zero G
    rows, so the padding contributes exactly 0).
    """
    s = int(input_shape)
    l1 = _conv_out_len(s, _K1, _S1)
    l2 = _conv_out_len(l1, _K2, _S2)
    h1 = l1 * _C1_OUT
    h2 = l2 * _C2_OUT
    h1p = _round_up(h1, 128)
    h2p = _round_up(h2, 128)
    fc1 = pt["fc1_w"].shape[0]
    feat = pt["fc2_w"].shape[0]

    # conv1 banded weight: W1b[s1*p + k, p*C1 + c] = conv1_w[c, 0, k]
    w1k = jnp.transpose(pt["conv1_w"][:, 0, :], (1, 0))            # [K1, C1]
    w1b = jnp.zeros((s, h1p), jnp.float32)
    for p in range(l1):
        w1b = w1b.at[_S1 * p:_S1 * p + _K1,
                     p * _C1_OUT:(p + 1) * _C1_OUT].set(w1k)
    b1b = jnp.zeros((1, h1p), jnp.float32).at[0, :h1].set(
        jnp.tile(pt["conv1_b"], l1))

    # conv2 banded weight: W2b[(s2*q + k)*C1 + ci, q*C2 + co] = conv2_w[co, ci, k]
    w2k = jnp.transpose(pt["conv2_w"], (2, 1, 0)).reshape(_K2 * _C1_OUT, _C2_OUT)
    w2b = jnp.zeros((h1p, h2p), jnp.float32)
    for q in range(l2):
        r0 = _S2 * q * _C1_OUT
        w2b = w2b.at[r0:r0 + _K2 * _C1_OUT,
                     q * _C2_OUT:(q + 1) * _C2_OUT].set(w2k)
    b2b = jnp.zeros((1, h2p), jnp.float32).at[0, :h2].set(
        jnp.tile(pt["conv2_b"], l2))

    # fc1: G[q*C2 + co, f] = fc1_w[f, co*L2 + q]  (undoes channel-major flatten)
    g = jnp.transpose(pt["fc1_w"].reshape(fc1, _C2_OUT, l2), (2, 1, 0))
    g = g.reshape(h2, fc1)
    g = jnp.zeros((h2p, fc1), jnp.float32).at[:h2, :].set(g)

    wf2 = jnp.transpose(pt["fc2_w"], (1, 0))                       # [256, feat]

    return {
        "w1b": w1b.astype(compute_dtype),
        "b1b": b1b,
        "w2b": w2b.astype(compute_dtype),
        "b2b": b2b,
        "g": g.astype(compute_dtype),
        "bf1": pt["fc1_b"].reshape(1, fc1).astype(jnp.float32),
        "wf2": wf2.astype(compute_dtype),
        "bf2": pt["fc2_b"].reshape(1, feat).astype(jnp.float32),
    }


# --------------------------------------------------------------------------- #
# Pure-JAX reference (faithful port of ScanEncoder.forward, input_channel=1)
# --------------------------------------------------------------------------- #
def reference_forward(x, pt):
    if x.ndim == 3:
        n, l, s = x.shape
        xb = x.reshape(n * l, 1, s)
    else:
        n, s = x.shape
        l = None
        xb = x.reshape(n, 1, s)

    def conv1d(inp, w, b, stride):
        out = jax.lax.conv_general_dilated(
            inp, w, window_strides=(stride,), padding="VALID",
            dimension_numbers=("NCH", "OIH", "NCH"))
        return out + b[None, :, None]

    h = jax.nn.relu(conv1d(xb, pt["conv1_w"], pt["conv1_b"], _S1))
    h = jax.nn.relu(conv1d(h, pt["conv2_w"], pt["conv2_b"], _S2))
    hf = h.reshape(h.shape[0], -1)                      # channel-major flatten
    z = jax.nn.relu(hf @ pt["fc1_w"].T + pt["fc1_b"])
    out = z @ pt["fc2_w"].T + pt["fc2_b"]
    if l is not None:
        out = out.reshape(n, l, -1)
    return out


if __name__ == "__main__":
    key = jax.random.PRNGKey(0)
    k_param, k_x1, k_x2 = jax.random.split(key, 3)

    input_shape = 32      # scan length S
    feature_dim = 128     # default feature_dim of the module

    pt_params = init_params(k_param, input_shape, feature_dim)
    kparams = build_kernel_params(pt_params, input_shape)   # f32 (exact) path

    # Test 1: small 3-D scan input [N, L, S] -> single-tile grid.
    n, seq = 2, 4
    x3 = jax.random.normal(k_x1, (n, seq, input_shape), dtype=jnp.float32)
    out3 = jax.block_until_ready(scan_encoder_forward(x3, kparams))
    ref3 = reference_forward(x3, pt_params)
    assert out3.shape == (n, seq, feature_dim)
    assert jnp.allclose(out3, ref3, atol=1e-3, rtol=1e-3), "3-D f32 path mismatch"

    # Test 2: larger 2-D batch -> multi-tile parallel grid with a partial last block.
    b2 = 200
    x2 = jax.random.normal(k_x2, (b2, input_shape), dtype=jnp.float32)
    out2 = jax.block_until_ready(scan_encoder_forward(x2, kparams, row_tile=64))
    ref2 = reference_forward(x2, pt_params)
    assert out2.shape == (b2, feature_dim)
    assert jnp.allclose(out2, ref2, atol=1e-3, rtol=1e-3), "2-D f32 path mismatch"

    # Test 3: bf16-operand variant (v6e/v7x MXU fast path), f32 accumulation.
    kparams_bf16 = build_kernel_params(pt_params, input_shape,
                                       compute_dtype=jnp.bfloat16)
    out2b = jax.block_until_ready(
        scan_encoder_forward(x2, kparams_bf16, row_tile=64))
    assert jnp.allclose(out2b, ref2, atol=2e-2, rtol=2e-2), "bf16 path mismatch"

    print("KERNEL_OK")
</pallas_src>

<mosaic_0001>
module attributes {stable_mosaic.version = 11 : i64} {
  func.func @_scan_encoder_kernel(%arg0: i32, %arg1: memref<8x32xf32, #tpu.memory_space<vmem>>, %arg2: memref<32x512xf32, #tpu.memory_space<vmem>>, %arg3: memref<1x512xf32, #tpu.memory_space<vmem>>, %arg4: memref<512x256xf32, #tpu.memory_space<vmem>>, %arg5: memref<1x256xf32, #tpu.memory_space<vmem>>, %arg6: memref<256x256xf32, #tpu.memory_space<vmem>>, %arg7: memref<1x256xf32, #tpu.memory_space<vmem>>, %arg8: memref<256x128xf32, #tpu.memory_space<vmem>>, %arg9: memref<1x128xf32, #tpu.memory_space<vmem>>, %arg10: memref<8x128xf32, #tpu.memory_space<vmem>>) attributes {dimension_semantics = [#tpu.dimension_semantics<parallel>], iteration_bounds = array<i64: 1>, scalar_prefetch = 0 : i64, scratch_operands = 0 : i64, tpu.core_type = #tpu.core_type<tc>, window_params = [{transform_indices = @transform_0, window_bounds = array<i64: 8, 32>}, {pipeline_mode = #tpu.pipeline_mode<synchronous>, transform_indices = @transform_1, window_bounds = array<i64: 32, 512>}, {pipeline_mode = #tpu.pipeline_mode<synchronous>, transform_indices = @transform_2, window_bounds = array<i64: 1, 512>}, {pipeline_mode = #tpu.pipeline_mode<synchronous>, transform_indices = @transform_3, window_bounds = array<i64: 512, 256>}, {pipeline_mode = #tpu.pipeline_mode<synchronous>, transform_indices = @transform_4, window_bounds = array<i64: 1, 256>}, {pipeline_mode = #tpu.pipeline_mode<synchronous>, transform_indices = @transform_5, window_bounds = array<i64: 256, 256>}, {pipeline_mode = #tpu.pipeline_mode<synchronous>, transform_indices = @transform_6, window_bounds = array<i64: 1, 256>}, {pipeline_mode = #tpu.pipeline_mode<synchronous>, transform_indices = @transform_7, window_bounds = array<i64: 256, 128>}, {pipeline_mode = #tpu.pipeline_mode<synchronous>, transform_indices = @transform_8, window_bounds = array<i64: 1, 128>}, {transform_indices = @transform_9, window_bounds = array<i64: 8, 128>}]} {
    %c0 = arith.constant 0 : index
    %c0_0 = arith.constant 0 : index
    %0 = vector.load %arg1[%c0, %c0_0] : memref<8x32xf32, #tpu.memory_space<vmem>>, vector<8x32xf32>
    %c0_1 = arith.constant 0 : index
    %c0_2 = arith.constant 0 : index
    %1 = vector.load %arg2[%c0_1, %c0_2] : memref<32x512xf32, #tpu.memory_space<vmem>>, vector<32x512xf32>
    %cst = arith.constant dense<0.000000e+00> : vector<8x512xf32>
    %2 = tpu.matmul %0, %1, %cst {dimension_numbers = #tpu.dot_dimension_numbers<[1], [0], [0], [1], [0, 0, 1, 1], [], []>} : vector<8x32xf32>, vector<32x512xf32>, vector<8x512xf32> -> vector<8x512xf32>
    %c0_3 = arith.constant 0 : index
    %c0_4 = arith.constant 0 : index
    %3 = vector.load %arg3[%c0_3, %c0_4] : memref<1x512xf32, #tpu.memory_space<vmem>>, vector<1x512xf32>
    %4 = vector.broadcast %3 : vector<1x512xf32> to vector<8x512xf32>
    %5 = arith.addf %2, %4 : vector<8x512xf32>
    %cst_5 = arith.constant 0.000000e+00 : f32
    %6 = vector.broadcast %cst_5 : f32 to vector<8x512xf32>
    %7 = arith.maximumf %5, %6 : vector<8x512xf32>
    %c0_6 = arith.constant 0 : index
    %c0_7 = arith.constant 0 : index
    %8 = vector.load %arg4[%c0_6, %c0_7] : memref<512x256xf32, #tpu.memory_space<vmem>>, vector<512x256xf32>
    %cst_8 = arith.constant dense<0.000000e+00> : vector<8x256xf32>
    %9 = tpu.matmul %7, %8, %cst_8 {dimension_numbers = #tpu.dot_dimension_numbers<[1], [0], [0], [1], [0, 0, 1, 1], [], []>} : vector<8x512xf32>, vector<512x256xf32>, vector<8x256xf32> -> vector<8x256xf32>
    %c0_9 = arith.constant 0 : index
    %c0_10 = arith.constant 0 : index
    %10 = vector.load %arg5[%c0_9, %c0_10] : memref<1x256xf32, #tpu.memory_space<vmem>>, vector<1x256xf32>
    %11 = vector.broadcast %10 : vector<1x256xf32> to vector<8x256xf32>
    %12 = arith.addf %9, %11 : vector<8x256xf32>
    %cst_11 = arith.constant 0.000000e+00 : f32
    %13 = vector.broadcast %cst_11 : f32 to vector<8x256xf32>
    %14 = arith.maximumf %12, %13 : vector<8x256xf32>
    %c0_12 = arith.constant 0 : index
    %c0_13 = arith.constant 0 : index
    %15 = vector.load %arg6[%c0_12, %c0_13] : memref<256x256xf32, #tpu.memory_space<vmem>>, vector<256x256xf32>
    %cst_14 = arith.constant dense<0.000000e+00> : vector<8x256xf32>
    %16 = tpu.matmul %14, %15, %cst_14 {dimension_numbers = #tpu.dot_dimension_numbers<[1], [0], [0], [1], [0, 0, 1, 1], [], []>} : vector<8x256xf32>, vector<256x256xf32>, vector<8x256xf32> -> vector<8x256xf32>
    %c0_15 = arith.constant 0 : index
    %c0_16 = arith.constant 0 : index
    %17 = vector.load %arg7[%c0_15, %c0_16] : memref<1x256xf32, #tpu.memory_space<vmem>>, vector<1x256xf32>
    %18 = vector.broadcast %17 : vector<1x256xf32> to vector<8x256xf32>
    %19 = arith.addf %16, %18 : vector<8x256xf32>
    %cst_17 = arith.constant 0.000000e+00 : f32
    %20 = vector.broadcast %cst_17 : f32 to vector<8x256xf32>
    %21 = arith.maximumf %19, %20 : vector<8x256xf32>
    %c0_18 = arith.constant 0 : index
    %c0_19 = arith.constant 0 : index
    %22 = vector.load %arg8[%c0_18, %c0_19] : memref<256x128xf32, #tpu.memory_space<vmem>>, vector<256x128xf32>
    %cst_20 = arith.constant dense<0.000000e+00> : vector<8x128xf32>
    %23 = tpu.matmul %21, %22, %cst_20 {dimension_numbers = #tpu.dot_dimension_numbers<[1], [0], [0], [1], [0, 0, 1, 1], [], []>} : vector<8x256xf32>, vector<256x128xf32>, vector<8x128xf32> -> vector<8x128xf32>
    %c0_21 = arith.constant 0 : index
    %c0_22 = arith.constant 0 : index
    %24 = vector.load %arg9[%c0_21, %c0_22] : memref<1x128xf32, #tpu.memory_space<vmem>>, vector<1x128xf32>
    %25 = vector.broadcast %24 : vector<1x128xf32> to vector<8x128xf32>
    %26 = arith.addf %23, %25 : vector<8x128xf32>
    %c0_23 = arith.constant 0 : index
    %c0_24 = arith.constant 0 : index
    %27 = vector.load %arg10[%c0_23, %c0_24] : memref<8x128xf32, #tpu.memory_space<vmem>>, vector<8x128xf32>
    tpu.vector_store %arg10[%c0_23, %c0_24], %26 {strides = array<i32>} : memref<8x128xf32, #tpu.memory_space<vmem>>, vector<8x128xf32>,
    return
  }
  func.func @transform_0(%arg0: i32) -> (i32, i32) {
    %c0_i32 = arith.constant 0 : i32
    %c0_i32_0 = arith.constant 0 : i32
    return %arg0, %c0_i32 : i32, i32
  }
  func.func @transform_1(%arg0: i32) -> (i32, i32) {
    %c0_i32 = arith.constant 0 : i32
    %c0_i32_0 = arith.constant 0 : i32
    %c0_i32_1 = arith.constant 0 : i32
    return %c0_i32, %c0_i32_0 : i32, i32
  }
  func.func @transform_2(%arg0: i32) -> (i32, i32) {
    %c0_i32 = arith.constant 0 : i32
    %c0_i32_0 = arith.constant 0 : i32
    %c0_i32_1 = arith.constant 0 : i32
    return %c0_i32, %c0_i32_0 : i32, i32
  }
  func.func @transform_3(%arg0: i32) -> (i32, i32) {
    %c0_i32 = arith.constant 0 : i32
    %c0_i32_0 = arith.constant 0 : i32
    %c0_i32_1 = arith.constant 0 : i32
    return %c0_i32, %c0_i32_0 : i32, i32
  }
  func.func @transform_4(%arg0: i32) -> (i32, i32) {
    %c0_i32 = arith.constant 0 : i32
    %c0_i32_0 = arith.constant 0 : i32
    %c0_i32_1 = arith.constant 0 : i32
    return %c0_i32, %c0_i32_0 : i32, i32
  }
  func.func @transform_5(%arg0: i32) -> (i32, i32) {
    %c0_i32 = arith.constant 0 : i32
    %c0_i32_0 = arith.constant 0 : i32
    %c0_i32_1 = arith.constant 0 : i32
    return %c0_i32, %c0_i32_0 : i32, i32
  }
  func.func @transform_6(%arg0: i32) -> (i32, i32) {
    %c0_i32 = arith.constant 0 : i32
    %c0_i32_0 = arith.constant 0 : i32
    %c0_i32_1 = arith.constant 0 : i32
    return %c0_i32, %c0_i32_0 : i32, i32
  }
  func.func @transform_7(%arg0: i32) -> (i32, i32) {
    %c0_i32 = arith.constant 0 : i32
    %c0_i32_0 = arith.constant 0 : i32
    %c0_i32_1 = arith.constant 0 : i32
    return %c0_i32, %c0_i32_0 : i32, i32
  }
  func.func @transform_8(%arg0: i32) -> (i32, i32) {
    %c0_i32 = arith.constant 0 : i32
    %c0_i32_0 = arith.constant 0 : i32
    %c0_i32_1 = arith.constant 0 : i32
    return %c0_i32, %c0_i32_0 : i32, i32
  }
  func.func @transform_9(%arg0: i32) -> (i32, i32) {
    %c0_i32 = arith.constant 0 : i32
    %c0_i32_0 = arith.constant 0 : i32
    return %arg0, %c0_i32 : i32, i32
  }
}

</mosaic_0001>

<bundles_post_ra>
// kernel: tpu_custom_call.1
= control target key start
LH: loop header
LB: loop body
LE: loop exit
PB: predicated region body
PF: predicated region fallthrough
CT: control target
= control target key end

     0   :  { %14 = vsyncpa [#allocation3], 0  ;;  %s1463_s0 = inlined_call_operand.hbm [shape: f32[8,32], index: 0, kind: input, shape index: {}]   ;;  %s1464_s1 = inlined_call_operand.hbm [shape: f32[32,512], index: 1, kind: input, shape index: {}]   ;;  %s1465_s2 = inlined_call_operand.vmem [shape: f32[1,512], index: 2, kind: input, shape index: {}]   ;;  %s1466_s3 = inlined_call_operand.hbm [shape: f32[512,256], index: 3, kind: input, shape index: {}]   ;;  %s1467_s4 = inlined_call_operand.vmem [shape: f32[1,256], index: 4, kind: input, shape index: {}]   ;;  %s1468_s5 = inlined_call_operand.hbm [shape: f32[256,256], index: 5, kind: input, shape index: {}]   ;;  %s1469_s6 = inlined_call_operand.vmem [shape: f32[1,256], index: 6, kind: input, shape index: {}]   ;;  %s1470_s7 = inlined_call_operand.hbm [shape: f32[256,128], index: 7, kind: input, shape index: {}]   ;;  %s1471_s8 = inlined_call_operand.vmem [shape: f32[1,128], index: 8, kind: input, shape index: {}]   ;;  %s1472_s9 = inlined_call_operand.hbm [shape: f32[8,128], index: 9, kind: output, shape index: {}]  }
   0x1   :  { %15 = vsyncpa [#allocation6], 0 }
   0x2   :  { %16 = vsyncpa [#allocation9], 0 }
   0x3   :  { %17 = vsyncpa [#allocation4], 0  ;;  %s1283_s30 = smov [#allocation5]   ;;  %s1143_s13 = scalar_lea.hbm %s1464_s1, 2048 }
   0x4   :  { %s33_s10 = sshll.u32 %s1283_s30, 4  ;;  %p1144_p0 = scmp.ne.s32.totalorder %s1464_s1, %s1143_s13  ;;  %s34_s10 = int_to_ptr.vmem [resolvable:$true] %s33_s10 }
   0x5   :  { %p1147_p1 = scmp.lt.u32.totalorder %s1143_s13, %s1464_s1 }
   0x7   :  { %p1149_p2 = pnand %p1147_p1, %p1144_p0 }
   0x9   :  { %1152 = shalt.err (!%p1149_p2)
}
   0xa   :  { %s1153_s18 = scalar_lea.vmem %s34_s10, 2048  ;;  %p1158_p4 = scmp.lt.s32.totalorder %s34_s10, %s34_s10 }
   0xb   :  { %p1154_p3 = scmp.ne.s32.totalorder %s34_s10, %s1153_s18  ;;  %p1159_p5 = scmp.lt.s32.totalorder %s1153_s18, %s1153_s18 }
   0xd   :  { %p1160_p6 = por %p1159_p5, %p1158_p4 }
   0xf   :  { %p1161_p7 = pnand %p1160_p6, %p1154_p3 }
  0x11   :  { %1164 = shalt.err (!%p1161_p7)
}
  0x12   :  { %s1284_s19 = smov 512   ;;  %s1285_s20 = smov 32  }
  0x13   :  { %39 = dma.hbm_to_vmem [thread:$0]  %s1464_s1, 2048, %s34_s10, [#allocation6], %s1284_s19, %s1284_s19, %s1285_s20  }
  0x14   :  { %s1286_s23 = smov [#allocation8]   ;;  %s1287_s25 = smov [#allocation2]  }
  0x15   :  { %s61_s24 = sshll.u32 %s1286_s23, 4  ;;  %s24_s26 = sshll.u32 %s1287_s25, 4  ;;  %s62_s24 = int_to_ptr.vmem [resolvable:$true] %s61_s24  ;;  %s25_s26 = int_to_ptr.vmem [resolvable:$true] %s24_s26 }
  0x16   :  { %s1165_s29 = scalar_lea.hbm %s1468_s5, 8192 }
  0x17   :  { %p1166_p8 = scmp.ne.s32.totalorder %s1468_s5, %s1165_s29  ;;  %p1169_p9 = scmp.lt.u32.totalorder %s1165_s29, %s1468_s5 }
  0x19   :  { %p1171_p10 = pnand %p1169_p9, %p1166_p8 }
  0x1b   :  { %1174 = shalt.err (!%p1171_p10)
}
  0x1c   :  { %s1175_s1 = scalar_lea.vmem %s62_s24, 8192  ;;  %p1180_p12 = scmp.lt.s32.totalorder %s62_s24, %s62_s24 }
  0x1d   :  { %p1176_p11 = scmp.ne.s32.totalorder %s62_s24, %s1175_s1  ;;  %p1181_p13 = scmp.lt.s32.totalorder %s1175_s1, %s1175_s1 }
  0x1f   :  { %p1182_p0 = por %p1181_p13, %p1180_p12 }
  0x21   :  { %p1183_p1 = pnand %p1182_p0, %p1176_p11 }
  0x23   :  { %1186 = shalt.err (!%p1183_p1)
}
  0x24   :  { %s1288_s10 = smov 256   ;;  %s1289_s14 = smov 16  }
  0x25   :  { %67 = dma.hbm_to_vmem [thread:$0]  %s1468_s5, 8192, %s62_s24, [#allocation9], %s1288_s10, %s1288_s10, %s1289_s14  }
  0x26   :  { %s1187_s19 = scalar_lea.hbm %s1463_s0, 128 }
  0x27   :  { %p1188_p2 = scmp.ne.s32.totalorder %s1463_s0, %s1187_s19  ;;  %p1191_p3 = scmp.lt.u32.totalorder %s1187_s19, %s1463_s0 }
  0x29   :  { %p1193_p4 = pnand %p1191_p3, %p1188_p2 }
  0x2b   :  { %1196 = shalt.err (!%p1193_p4)
}
  0x2c   :  { %s1197_s25 = scalar_lea.vmem %s25_s26, 128  ;;  %p1202_p6 = scmp.lt.s32.totalorder %s25_s26, %s25_s26 }
  0x2d   :  { %p1198_p5 = scmp.ne.s32.totalorder %s25_s26, %s1197_s25  ;;  %p1203_p7 = scmp.lt.s32.totalorder %s1197_s25, %s1197_s25 }
  0x2f   :  { %p1204_p8 = por %p1203_p7, %p1202_p6 }
  0x31   :  { %p1205_p9 = pnand %p1204_p8, %p1198_p5 }
  0x33   :  { %1208 = shalt.err (!%p1205_p9)
}
  0x34   :  { %27 = dma.hbm_to_vmem [thread:$0]  %s1463_s0, 128, %s25_s26, [#allocation3]  }
  0x35   :  { %s1290_s27 = smov [#allocation7]   ;;  %s1291_s29 = smov [#allocation10]  }
  0x36   :  { %s47_s28 = sshll.u32 %s1290_s27, 4  ;;  %s75_s30 = sshll.u32 %s1291_s29, 4  ;;  %s48_s28 = int_to_ptr.vmem [resolvable:$true] %s47_s28  ;;  %s76_s30 = int_to_ptr.vmem [resolvable:$true] %s75_s30 }
  0x37   :  { %s1209_s13 = scalar_lea.hbm %s1466_s3, 16384 }
  0x38   :  { %p1210_p10 = scmp.ne.s32.totalorder %s1466_s3, %s1209_s13  ;;  %p1213_p11 = scmp.lt.u32.totalorder %s1209_s13, %s1466_s3 }
  0x3a   :  { %p1215_p12 = pnand %p1213_p11, %p1210_p10 }
  0x3c   :  { %1218 = shalt.err (!%p1215_p12)
}
  0x3d   :  { %s1219_s0 = scalar_lea.vmem %s48_s28, 16384  ;;  %p1224_p0 = scmp.lt.s32.totalorder %s48_s28, %s48_s28 }
  0x3e   :  { %p1220_p13 = scmp.ne.s32.totalorder %s48_s28, %s1219_s0  ;;  %p1225_p1 = scmp.lt.s32.totalorder %s1219_s0, %s1219_s0 }
  0x40   :  { %p1226_p2 = por %p1225_p1, %p1224_p0 }
  0x42   :  { %p1227_p3 = pnand %p1226_p2, %p1220_p13 }
  0x44   :  { %1230 = shalt.err (!%p1227_p3)
}
  0x45   :  { %53 = dma.hbm_to_vmem [thread:$0]  %s1466_s3, 16384, %s48_s28, [#allocation6], %s1288_s10, %s1288_s10, %s1289_s14  }
  0x46   :  { %s1231_s21 = scalar_lea.hbm %s1470_s7, 4096 }
  0x47   :  { %p1232_p4 = scmp.ne.s32.totalorder %s1470_s7, %s1231_s21  ;;  %p1235_p5 = scmp.lt.u32.totalorder %s1231_s21, %s1470_s7 }
  0x49   :  { %p1237_p6 = pnand %p1235_p5, %p1232_p4 }
  0x4b   :  { %1240 = shalt.err (!%p1237_p6)
}
  0x4c   :  { %s1241_s24 = scalar_lea.vmem %s76_s30, 4096  ;;  %p1246_p8 = scmp.lt.s32.totalorder %s76_s30, %s76_s30 }
  0x4d   :  { %p1242_p7 = scmp.ne.s32.totalorder %s76_s30, %s1241_s24  ;;  %p1247_p9 = scmp.lt.s32.totalorder %s1241_s24, %s1241_s24 }
  0x4f   :  { %p1248_p10 = por %p1247_p9, %p1246_p8 }
  0x51   :  { %p1249_p11 = pnand %p1248_p10, %p1242_p7 }
  0x53   :  { %1252 = shalt.err (!%p1249_p11)
}
  0x54   :  { %s1292_s3 = smov 128   ;;  %s1293_s10 = smov 8  }
  0x55   :  { %81 = dma.hbm_to_vmem [thread:$0]  %s1470_s7, 4096, %s76_s30, [#allocation9], %s1292_s3, %s1292_s3, %s1293_s10  }
  0x56   :  { %1275 = dma.done.wait [#allocation3], 128  }
  0x57   :  { %1276 = vsyncadd [#allocation3], 4294967168 }
  0x58   :  { %1277 = dma.done.wait [#allocation6], 18432  }
  0x59   :  { %1278 = vsyncadd [#allocation6], 4294948864 }
  0x5a   :  { %1279 = dma.done.wait [#allocation9], 12288  }
  0x5b   :  { %1280 = vsyncadd [#allocation9], 4294955008  ;;  %v1294_v0 = vmov 0.0   ;;  %v101_v1 = vld [vmem:[#allocation5 + $0x8] sm:$0xff]  ;;  %v100_v3 = vld [vmem:[#allocation5] sm:$0xff]  ;;  %vm138_vm0 = vcmask 261120  }
  0x5c   :  { %206 = vmatprep.mubr.f32.mxu1 %v1294_v0  ;;  %v105_v2 = vld [vmem:[#allocation5 + $0x28] sm:$0xff]  ;;  %v104_v5 = vld [vmem:[#allocation5 + $0x20] sm:$0xff]  ;;  %v103_v12 = vld [vmem:[#allocation5 + $0x18] sm:$0xff]  ;;  %s1295_s13 = smov [#allocation11]  }
  0x5d   :  { %v886_v4 = vpack.c.bf16 %v105_v2, %v101_v1  ;;  %v109_v6 = vld [vmem:[#allocation5 + $0x48] sm:$0xff]  ;;  %v888_v8 = vpack.c.bf16 %v104_v5, %v100_v3  ;;  %v108_v10 = vld [vmem:[#allocation5 + $0x40] sm:$0xff]  ;;  %v107_v13 = vld [vmem:[#allocation5 + $0x38] sm:$0xff] }
  0x5e   :  { %v113_v7 = vld [vmem:[#allocation5 + $0x68] sm:$0xff]  ;;  %v112_v11 = vld [vmem:[#allocation5 + $0x60] sm:$0xff]  ;;  %v102_v15 = vld [vmem:[#allocation5 + $0x10] sm:$0xff]  ;;  %v894_v17 = vpack.c.bf16 %v107_v13, %v103_v12 }
  0x5f   :  { %v890_v9 = vpack.c.bf16 %v113_v7, %v109_v6  ;;  %887 = vmatprep.subr.bf16.mxu1 %v886_v4  ;;  %v892_v14 = vpack.c.bf16 %v112_v11, %v108_v10  ;;  %v106_v16 = vld [vmem:[#allocation5 + $0x30] sm:$0xff]  ;;  %v111_v18 = vld [vmem:[#allocation5 + $0x58] sm:$0xff]  ;;  %v289_v20 = vld [vmem:[#allocation7 + $0x8] sm:$0xff] }
  0x60   :  { %889 = vmatpush1.bf16.msra.mxu1 %v888_v8  ;;  %v115_v19 = vld [vmem:[#allocation5 + $0x78] sm:$0xff]  ;;  %v288_v23 = vld [vmem:[#allocation7] sm:$0xff]  ;;  %v290_v24 = vld [vmem:[#allocation7 + $0x10] sm:$0xff]  ;;  %v896_v30 = vpack.c.bf16 %v106_v16, %v102_v15 }
  0x61   :  { %891 = vmatprep.subr.bf16.mxu1 %v890_v9  ;;  %v99_v21 = vld [vmem:[#allocation2] sm:$0xff]  ;;  %v904_v26 = vpack.c.bf16 %v290_v24, %v288_v23  ;;  %v293_v27 = vld [vmem:[#allocation7 + $0x28] sm:$0xff]  ;;  %v292_v29 = vld [vmem:[#allocation7 + $0x20] sm:$0xff]  ;;  %v898_v35 = vpack.c.bf16 %v115_v19, %v111_v18 }
  0x62   :  { %v291_v22 = vld [vmem:[#allocation7 + $0x18] sm:$0xff]  ;;  %v294_v32 = vld [vmem:[#allocation7 + $0x30] sm:$0xff]  ;;  %v297_v33 = vld [vmem:[#allocation7 + $0x48] sm:$0xff] }
  0x63   :  { %v902_v25 = vpack.c.bf16 %v291_v22, %v289_v20  ;;  %v295_v28 = vld [vmem:[#allocation7 + $0x38] sm:$0xff]  ;;  %v110_v36 = vld [vmem:[#allocation5 + $0x50] sm:$0xff]  ;;  %v908_v38 = vpack.c.bf16 %v294_v32, %v292_v29  ;;  %v296_v40 = vld [vmem:[#allocation7 + $0x40] sm:$0xff] }
  0x64   :  { %893 = vmatpush1.bf16.msra.mxu1 %v892_v14  ;;  %v906_v31 = vpack.c.bf16 %v295_v28, %v293_v27  ;;  %v299_v34 = vld [vmem:[#allocation7 + $0x58] sm:$0xff]  ;;  %v114_v37 = vld [vmem:[#allocation5 + $0x70] sm:$0xff]  ;;  %v301_v43 = vld [vmem:[#allocation7 + $0x68] sm:$0xff] }
  0x65   :  { %895 = vmatprep.subr.bf16.mxu1 %v894_v17  ;;  %903 = vmatprep.subr.bf16.mxu0 %v902_v25  ;;  %v910_v39 = vpack.c.bf16 %v299_v34, %v297_v33  ;;  %v298_v41 = vld [vmem:[#allocation7 + $0x50] sm:$0xff]  ;;  %v900_v42 = vpack.c.bf16 %v114_v37, %v110_v36  ;;  %v303_v44 = vld [vmem:[#allocation7 + $0x78] sm:$0xff]  ;;  %v300_v47 = vld [vmem:[#allocation7 + $0x60] sm:$0xff] }
  0x66   :  { %905 = vmatpush1.bf16.msra.mxu0 %v904_v26  ;;  %v912_v45 = vpack.c.bf16 %v298_v41, %v296_v40  ;;  %v914_v46 = vpack.c.bf16 %v303_v44, %v301_v43  ;;  %v302_v48 = vld [vmem:[#allocation7 + $0x70] sm:$0xff]  ;;  %v305_v49 = vld [vmem:[#allocation7 + $0x88] sm:$0xff]  ;;  %v307_v50 = vld [vmem:[#allocation7 + $0x98] sm:$0xff] }
  0x67   :  { %848 = vmatmul.mubr.msk.f32.vlgmr.msra.gmra.mrb[0].mxu1 %vm138_vm0, %v99_v21  ;;  %907 = vmatprep.subr.bf16.mxu0 %v906_v31  ;;  %v916_v51 = vpack.c.bf16 %v302_v48, %v300_v47  ;;  %v918_v52 = vpack.c.bf16 %v307_v50, %v305_v49  ;;  %v304_v53 = vld [vmem:[#allocation7 + $0x80] sm:$0xff]  ;;  %v306_v54 = vld [vmem:[#allocation7 + $0x90] sm:$0xff]  ;;  %v309_v55 = vld [vmem:[#allocation7 + $0xa8] sm:$0xff] }
  0x68   :  { %897 = vmatpush1.bf16.msra.mxu1 %v896_v30  ;;  %277 = vmatprep.mubr.f32.mxu1 %v1294_v0  ;;  %v311_v56 = vld [vmem:[#allocation7 + $0xb8] sm:$0xff]  ;;  %v920_v57 = vpack.c.bf16 %v306_v54, %v304_v53  ;;  %v308_v59 = vld [vmem:[#allocation7 + $0xa0] sm:$0xff]  ;;  %v310_v60 = vld [vmem:[#allocation7 + $0xb0] sm:$0xff] }
  0x69   :  { %899 = vmatprep.subr.bf16.mxu1 %v898_v35  ;;  %v922_v58 = vpack.c.bf16 %v311_v56, %v309_v55  ;;  %v313_v61 = vld [vmem:[#allocation7 + $0xc8] sm:$0xff]  ;;  %v315_v62 = vld [vmem:[#allocation7 + $0xd8] sm:$0xff]  ;;  %v924_v63 = vpack.c.bf16 %v310_v60, %v308_v59  ;;  %v312_v1 = vld [vmem:[#allocation7 + $0xc0] sm:$0xff] }
  0x6a   :  { %909 = vmatpush1.bf16.msra.mxu0 %v908_v38  ;;  %v926_v0 = vpack.c.bf16 %v315_v62, %v313_v61  ;;  %v314_v2 = vld [vmem:[#allocation7 + $0xd0] sm:$0xff]  ;;  %v317_v3 = vld [vmem:[#allocation7 + $0xe8] sm:$0xff]  ;;  %v319_v4 = vld [vmem:[#allocation7 + $0xf8] sm:$0xff] }
  0x6b   :  { %911 = vmatprep.subr.bf16.mxu0 %v910_v39  ;;  %v928_v5 = vpack.c.bf16 %v314_v2, %v312_v1  ;;  %v930_v6 = vpack.c.bf16 %v319_v4, %v317_v3  ;;  %v316_v7 = vld [vmem:[#allocation7 + $0xe0] sm:$0xff]  ;;  %v318_v8 = vld [vmem:[#allocation7 + $0xf0] sm:$0xff]  ;;  %v321_v9 = vld [vmem:[#allocation7 + $0x108] sm:$0xff] }
  0x6c   :  { %901 = vmatpush1.bf16.msra.mxu1 %v900_v42  ;;  %v323_v10 = vld [vmem:[#allocation7 + $0x118] sm:$0xff]  ;;  %v932_v11 = vpack.c.bf16 %v318_v8, %v316_v7  ;;  %v320_v13 = vld [vmem:[#allocation7 + $0x100] sm:$0xff]  ;;  %v322_v14 = vld [vmem:[#allocation7 + $0x110] sm:$0xff] }
  0x6d   :  { %v934_v12 = vpack.c.bf16 %v323_v10, %v321_v9  ;;  %v325_v15 = vld [vmem:[#allocation7 + $0x128] sm:$0xff]  ;;  %v327_v16 = vld [vmem:[#allocation7 + $0x138] sm:$0xff]  ;;  %v936_v17 = vpack.c.bf16 %v322_v14, %v320_v13  ;;  %v324_v19 = vld [vmem:[#allocation7 + $0x120] sm:$0xff] }
  0x6e   :  { %913 = vmatpush1.bf16.msra.mxu0 %v912_v45  ;;  %v938_v18 = vpack.c.bf16 %v327_v16, %v325_v15  ;;  %v326_v20 = vld [vmem:[#allocation7 + $0x130] sm:$0xff]  ;;  %v331_v22 = vld [vmem:[#allocation7 + $0x158] sm:$0xff]  ;;  %v328_v25 = vld [vmem:[#allocation7 + $0x140] sm:$0xff] }
  0x6f   :  { %849 = vmatmul.mubr.msk.f32.vlgmr.msra.gmra.mrb[2].mxu1 %vm138_vm0, %v99_v21  ;;  %915 = vmatprep.subr.bf16.mxu0 %v914_v46  ;;  %v329_v21 = vld [vmem:[#allocation7 + $0x148] sm:$0xff]  ;;  %v940_v23 = vpack.c.bf16 %v326_v20, %v324_v19  ;;  %v330_v26 = vld [vmem:[#allocation7 + $0x150] sm:$0xff]  ;;  %v335_v28 = vld [vmem:[#allocation7 + $0x178] sm:$0xff] }
  0x70   :  { %v942_v24 = vpack.c.bf16 %v331_v22, %v329_v21  ;;  %v333_v27 = vld [vmem:[#allocation7 + $0x168] sm:$0xff]  ;;  %v944_v29 = vpack.c.bf16 %v330_v26, %v328_v25  ;;  %v332_v31 = vld [vmem:[#allocation7 + $0x160] sm:$0xff]  ;;  %v334_v32 = vld [vmem:[#allocation7 + $0x170] sm:$0xff] }
  0x71   :  { %v946_v30 = vpack.c.bf16 %v335_v28, %v333_v27  ;;  %v337_v33 = vld [vmem:[#allocation7 + $0x188] sm:$0xff]  ;;  %v339_v34 = vld [vmem:[#allocation7 + $0x198] sm:$0xff]  ;;  %v948_v35 = vpack.c.bf16 %v334_v32, %v332_v31  ;;  %v336_v37 = vld [vmem:[#allocation7 + $0x180] sm:$0xff] }
  0x72   :  { %917 = vmatpush1.bf16.msra.mxu0 %v916_v51  ;;  %v950_v36 = vpack.c.bf16 %v339_v34, %v337_v33  ;;  %v338_v38 = vld [vmem:[#allocation7 + $0x190] sm:$0xff]  ;;  %v341_v39 = vld [vmem:[#allocation7 + $0x1a8] sm:$0xff]  ;;  %v343_v40 = vld [vmem:[#allocation7 + $0x1b8] sm:$0xff] }
  0x73   :  { %919 = vmatprep.subr.bf16.mxu0 %v918_v52  ;;  %v952_v41 = vpack.c.bf16 %v338_v38, %v336_v37  ;;  %v954_v42 = vpack.c.bf16 %v343_v40, %v341_v39  ;;  %v340_v43 = vld [vmem:[#allocation7 + $0x1a0] sm:$0xff]  ;;  %v342_v44 = vld [vmem:[#allocation7 + $0x1b0] sm:$0xff]  ;;  %v345_v45 = vld [vmem:[#allocation7 + $0x1c8] sm:$0xff] }
  0x74   :  { %v347_v46 = vld [vmem:[#allocation7 + $0x1d8] sm:$0xff]  ;;  %v956_v47 = vpack.c.bf16 %v342_v44, %v340_v43  ;;  %v344_v49 = vld [vmem:[#allocation7 + $0x1c0] sm:$0xff]  ;;  %v346_v50 = vld [vmem:[#allocation7 + $0x1d0] sm:$0xff] }
  0x75   :  { %v958_v48 = vpack.c.bf16 %v347_v46, %v345_v45  ;;  %v960_v51 = vpack.c.bf16 %v346_v50, %v344_v49  ;;  %v349_v52 = vld [vmem:[#allocation7 + $0x1e8] sm:$0xff]  ;;  %v351_v53 = vld [vmem:[#allocation7 + $0x1f8] sm:$0xff]  ;;  %v348_v55 = vld [vmem:[#allocation7 + $0x1e0] sm:$0xff] }
  0x76   :  { %921 = vmatpush1.bf16.msra.mxu0 %v920_v57  ;;  %v962_v54 = vpack.c.bf16 %v351_v53, %v349_v52  ;;  %v350_v56 = vld [vmem:[#allocation7 + $0x1f0] sm:$0xff]  ;;  %v355_v59 = vld [vmem:[#allocation7 + $0x218] sm:$0xff]  ;;  %v573_v61 = vld [vmem:[#allocation8 + $0x8] sm:$0xff] }
  0x77   :  { %923 = vmatprep.subr.bf16.mxu0 %v922_v58  ;;  %v964_v57 = vpack.c.bf16 %v350_v56, %v348_v55  ;;  %v353_v58 = vld [vmem:[#allocation7 + $0x208] sm:$0xff]  ;;  %v575_v62 = vld [vmem:[#allocation8 + $0x18] sm:$0xff]  ;;  %v574_v1 = vld [vmem:[#allocation8 + $0x10] sm:$0xff] }
  0x78   :  { %v966_v60 = vpack.c.bf16 %v355_v59, %v353_v58  ;;  %v577_v2 = vld [vmem:[#allocation8 + $0x28] sm:$0xff]  ;;  %v579_v3 = vld [vmem:[#allocation8 + $0x38] sm:$0xff]  ;;  %v578_v7 = vld [vmem:[#allocation8 + $0x30] sm:$0xff] }
  0x79   :  { %v581_v8 = vld [vmem:[#allocation8 + $0x48] sm:$0xff]  ;;  %v583_v9 = vld [vmem:[#allocation8 + $0x58] sm:$0xff]  ;;  %v582_v13 = vld [vmem:[#allocation8 + $0x50] sm:$0xff] }
  0x7a   :  { %925 = vmatpush1.bf16.msra.mxu0 %v924_v63  ;;  %v572_v63 = vld [vmem:[#allocation8] sm:$0xff]  ;;  %v585_v14 = vld [vmem:[#allocation8 + $0x68] sm:$0xff]  ;;  %v587_v15 = vld [vmem:[#allocation8 + $0x78] sm:$0xff] }
  0x7b   :  { %927 = vmatprep.subr.bf16.mxu0 %v926_v0  ;;  %v1030_v0 = vpack.c.bf16 %v575_v62, %v573_v61  ;;  %v1032_v4 = vpack.c.bf16 %v574_v1, %v572_v63  ;;  %v586_v19 = vld [vmem:[#allocation8 + $0x70] sm:$0xff]  ;;  %v589_v20 = vld [vmem:[#allocation8 + $0x88] sm:$0xff]  ;;  %v591_v21 = vld [vmem:[#allocation8 + $0x98] sm:$0xff] }
  0x7c   :  { %v590_v25 = vld [vmem:[#allocation8 + $0x90] sm:$0xff]  ;;  %v593_v26 = vld [vmem:[#allocation8 + $0xa8] sm:$0xff]  ;;  %v595_v27 = vld [vmem:[#allocation8 + $0xb8] sm:$0xff] }
  0x7d   :  { %1031 = vmatprep.subr.bf16.mxu1 %v1030_v0  ;;  %v594_v31 = vld [vmem:[#allocation8 + $0xb0] sm:$0xff]  ;;  %v597_v32 = vld [vmem:[#allocation8 + $0xc8] sm:$0xff]  ;;  %v599_v33 = vld [vmem:[#allocation8 + $0xd8] sm:$0xff] }
  0x7e   :  { %929 = vmatpush1.bf16.msra.mxu0 %v928_v5  ;;  %v1034_v5 = vpack.c.bf16 %v579_v3, %v577_v2  ;;  %1033 = vmatpush1.bf16.msra.mxu1 %v1032_v4  ;;  %v598_v37 = vld [vmem:[#allocation8 + $0xd0] sm:$0xff]  ;;  %v601_v38 = vld [vmem:[#allocation8 + $0xe8] sm:$0xff]  ;;  %v603_v39 = vld [vmem:[#allocation8 + $0xf8] sm:$0xff]  ;;  %v118_v4 = vlaneseq }
  0x7f   :  { %931 = vmatprep.subr.bf16.mxu0 %v930_v6  ;;  %v576_v6 = vld [vmem:[#allocation8 + $0x20] sm:$0xff]  ;;  %v602_v43 = vld [vmem:[#allocation8 + $0xf0] sm:$0xff]  ;;  %v605_v44 = vld [vmem:[#allocation8 + $0x108] sm:$0xff] }
  0x80   :  { %v1036_v10 = vpack.c.bf16 %v578_v7, %v576_v6  ;;  %1035 = vmatprep.subr.bf16.mxu1 %v1034_v5  ;;  %v607_v45 = vld [vmem:[#allocation8 + $0x118] sm:$0xff]  ;;  %v606_v49 = vld [vmem:[#allocation8 + $0x110] sm:$0xff]  ;;  %v609_v50 = vld [vmem:[#allocation8 + $0x128] sm:$0xff] }
  0x81   :  { %v610_v55 = vld [vmem:[#allocation8 + $0x130] sm:$0xff]  ;;  %v613_v56 = vld [vmem:[#allocation8 + $0x148] sm:$0xff]  ;;  %v619_v63 = vld [vmem:[#allocation8 + $0x178] sm:$0xff] }
  0x82   :  { %933 = vmatpush1.bf16.msra.mxu0 %v932_v11  ;;  %v1038_v11 = vpack.c.bf16 %v583_v9, %v581_v8  ;;  %1037 = vmatpush1.bf16.msra.mxu1 %v1036_v10  ;;  %v614_v61 = vld [vmem:[#allocation8 + $0x150] sm:$0xff]  ;;  %v617_v62 = vld [vmem:[#allocation8 + $0x168] sm:$0xff]  ;;  %v616_v2 = vld [vmem:[#allocation8 + $0x160] sm:$0xff] }
  0x83   :  { %935 = vmatprep.subr.bf16.mxu0 %v934_v12  ;;  %v580_v12 = vld [vmem:[#allocation8 + $0x40] sm:$0xff]  ;;  %v1074_v1 = vpack.c.bf16 %v619_v63, %v617_v62  ;;  %v618_v3 = vld [vmem:[#allocation8 + $0x170] sm:$0xff]  ;;  %v621_v5 = vld [vmem:[#allocation8 + $0x188] sm:$0xff] }
  0x84   :  { %v1040_v16 = vpack.c.bf16 %v582_v13, %v580_v12  ;;  %1039 = vmatprep.subr.bf16.mxu1 %v1038_v11  ;;  %v623_v6 = vld [vmem:[#allocation8 + $0x198] sm:$0xff]  ;;  %v1076_v7 = vpack.c.bf16 %v618_v3, %v616_v2  ;;  %v620_v9 = vld [vmem:[#allocation8 + $0x180] sm:$0xff]  ;;  %v622_v10 = vld [vmem:[#allocation8 + $0x190] sm:$0xff]  ;;  %v1414_v11 = vshrl.u32 %v118_v4, 7 }
  0x85   :  { %v1078_v8 = vpack.c.bf16 %v623_v6, %v621_v5  ;;  %v625_v12 = vld [vmem:[#allocation8 + $0x1a8] sm:$0xff]  ;;  %v627_v13 = vld [vmem:[#allocation8 + $0x1b8] sm:$0xff]  ;;  %v368_v63 = vld [vmem:[#allocation7 + $0x280] sm:$0xff] }
  0x86   :  { %937 = vmatpush1.bf16.msra.mxu0 %v936_v17  ;;  %v1042_v17 = vpack.c.bf16 %v587_v15, %v585_v14  ;;  %1041 = vmatpush1.bf16.msra.mxu1 %v1040_v16  ;;  %v1080_v14 = vpack.c.bf16 %v622_v10, %v620_v9  ;;  %v1082_v15 = vpack.c.bf16 %v627_v13, %v625_v12  ;;  %v624_v16 = vld [vmem:[#allocation8 + $0x1a0] sm:$0xff]  ;;  %v375_v2 = vld [vmem:[#allocation7 + $0x2b8] sm:$0xff]  ;;  %v374_v6 = vld [vmem:[#allocation7 + $0x2b0] sm:$0xff] }
  0x87   :  { %939 = vmatprep.subr.bf16.mxu0 %v938_v18  ;;  %v584_v18 = vld [vmem:[#allocation8 + $0x60] sm:$0xff]  ;;  %v378_v13 = vld [vmem:[#allocation7 + $0x2d0] sm:$0xff] }
  0x88   :  { %v1044_v22 = vpack.c.bf16 %v586_v19, %v584_v18  ;;  %1043 = vmatprep.subr.bf16.mxu1 %v1042_v17  ;;  %v626_v17 = vld [vmem:[#allocation8 + $0x1b0] sm:$0xff]  ;;  %v1417_v18 = vsub.s32 0, %v1414_v11  ;;  %v629_v19 = vld [vmem:[#allocation8 + $0x1c8] sm:$0xff]  ;;  %v372_v5 = vld [vmem:[#allocation7 + $0x2a0] sm:$0xff] }
  0x89   :  { %v988_v9 = vpack.c.bf16 %v374_v6, %v372_v5  ;;  %v376_v12 = vld [vmem:[#allocation7 + $0x2c0] sm:$0xff] }
  0x8a   :  { %941 = vmatpush1.bf16.msra.mxu0 %v940_v23  ;;  %v1046_v23 = vpack.c.bf16 %v591_v21, %v589_v20  ;;  %1045 = vmatpush1.bf16.msra.mxu1 %v1044_v22  ;;  %v631_v20 = vld [vmem:[#allocation8 + $0x1d8] sm:$0xff]  ;;  %v1425_v22 = vsub.s32 1, %v1414_v11 }
  0x8b   :  { %943 = vmatprep.subr.bf16.mxu0 %v942_v24  ;;  %v588_v24 = vld [vmem:[#allocation8 + $0x80] sm:$0xff]  ;;  %v1422_v21 = vld [vmem:[%s1465_s2] sm:$0xf] }
  0x8c   :  { %v1048_v28 = vpack.c.bf16 %v590_v25, %v588_v24  ;;  %1047 = vmatprep.subr.bf16.mxu1 %v1046_v23  ;;  %v1084_v23 = vpack.c.bf16 %v626_v17, %v624_v16  ;;  %v1086_v24 = vpack.c.bf16 %v631_v20, %v629_v19  ;;  %v121_v25 = vrot.slane %v1422_v21, %v1417_v18  ;;  %v380_v19 = vld [vmem:[#allocation7 + $0x2e0] sm:$0xff]  ;;  %v382_v20 = vld [vmem:[#allocation7 + $0x2f0] sm:$0xff] }
  0x8d   :  { %v992_v16 = vpack.c.bf16 %v378_v13, %v376_v12  ;;  %v628_v13 = vld [vmem:[#allocation8 + $0x1c0] sm:$0xff] }
  0x8e   :  { %945 = vmatpush1.bf16.msra.mxu0 %v944_v29  ;;  %v1050_v29 = vpack.c.bf16 %v595_v27, %v593_v26  ;;  %1049 = vmatpush1.bf16.msra.mxu1 %v1048_v28  ;;  %v125_v26 = vrot.slane %v1422_v21, %v1425_v22 }
  0x8f   :  { %947 = vmatprep.subr.bf16.mxu0 %v946_v30  ;;  %v592_v30 = vld [vmem:[#allocation8 + $0xa0] sm:$0xff] }
  0x90   :  { %v1052_v34 = vpack.c.bf16 %v594_v31, %v592_v30  ;;  %1051 = vmatprep.subr.bf16.mxu1 %v1050_v29  ;;  %v352_v30 = vld [vmem:[#allocation7 + $0x200] sm:$0xff]  ;;  %v354_v31 = vld [vmem:[#allocation7 + $0x210] sm:$0xff] }
  0x92   :  { %949 = vmatpush1.bf16.msra.mxu0 %v948_v35  ;;  %v1054_v35 = vpack.c.bf16 %v599_v33, %v597_v32  ;;  %1053 = vmatpush1.bf16.msra.mxu1 %v1052_v34  ;;  %v357_v33 = vld [vmem:[#allocation7 + $0x228] sm:$0xff]  ;;  %v359_v34 = vld [vmem:[#allocation7 + $0x238] sm:$0xff] }
  0x93   :  { %951 = vmatprep.subr.bf16.mxu0 %v950_v36  ;;  %v596_v36 = vld [vmem:[#allocation8 + $0xc0] sm:$0xff] }
  0x94   :  { %v1056_v40 = vpack.c.bf16 %v598_v37, %v596_v36  ;;  %1055 = vmatprep.subr.bf16.mxu1 %v1054_v35  ;;  %v132_v35 = vsub.s32 3, %v1414_v11  ;;  %v968_v37 = vpack.c.bf16 %v354_v31, %v352_v30  ;;  %v391_v30 = vld [vmem:[#allocation7 + $0x338] sm:$0xff] }
  0x96   :  { %953 = vmatpush1.bf16.msra.mxu0 %v952_v41  ;;  %v1058_v41 = vpack.c.bf16 %v603_v39, %v601_v38  ;;  %1057 = vmatpush1.bf16.msra.mxu1 %v1056_v40  ;;  %v970_v39 = vpack.c.bf16 %v359_v34, %v357_v33  ;;  %v356_v40 = vld [vmem:[#allocation7 + $0x220] sm:$0xff]  ;;  %v390_v34 = vld [vmem:[#allocation7 + $0x330] sm:$0xff] }
  0x97   :  { %955 = vmatprep.subr.bf16.mxu0 %v954_v42  ;;  %v600_v42 = vld [vmem:[#allocation8 + $0xe0] sm:$0xff] }
  0x98   :  { %v1060_v46 = vpack.c.bf16 %v602_v43, %v600_v42  ;;  %1059 = vmatprep.subr.bf16.mxu1 %v1058_v41  ;;  %v358_v41 = vld [vmem:[#allocation7 + $0x230] sm:$0xff]  ;;  %v361_v42 = vld [vmem:[#allocation7 + $0x248] sm:$0xff]  ;;  %v363_v43 = vld [vmem:[#allocation7 + $0x258] sm:$0xff] }
  0x99   :  { %v388_v33 = vld [vmem:[#allocation7 + $0x320] sm:$0xff] }
  0x9a   :  { %957 = vmatpush1.bf16.msra.mxu0 %v956_v47  ;;  %v1062_v47 = vpack.c.bf16 %v607_v45, %v605_v44  ;;  %1061 = vmatpush1.bf16.msra.mxu1 %v1060_v46  ;;  %v133_v44 = vrot.slane %v1422_v21, %v132_v35  ;;  %v972_v45 = vpack.c.bf16 %v358_v41, %v356_v40  ;;  %v393_v35 = vld [vmem:[#allocation7 + $0x348] sm:$0xff]  ;;  %v394_v40 = vld [vmem:[#allocation7 + $0x350] sm:$0xff] }
  0x9b   :  { %959 = vmatprep.subr.bf16.mxu0 %v958_v48  ;;  %v604_v48 = vld [vmem:[#allocation8 + $0x100] sm:$0xff]  ;;  %v397_v41 = vld [vmem:[#allocation7 + $0x368] sm:$0xff] }
  0x9c   :  { %v1064_v52 = vpack.c.bf16 %v606_v49, %v604_v48  ;;  %1063 = vmatprep.subr.bf16.mxu1 %v1062_v47  ;;  %v974_v47 = vpack.c.bf16 %v363_v43, %v361_v42  ;;  %v360_v48 = vld [vmem:[#allocation7 + $0x240] sm:$0xff]  ;;  %v362_v49 = vld [vmem:[#allocation7 + $0x250] sm:$0xff]  ;;  %v399_v42 = vld [vmem:[#allocation7 + $0x378] sm:$0xff] }
  0x9e   :  { %961 = vmatpush1.bf16.msra.mxu0 %v960_v51  ;;  %v611_v51 = vld [vmem:[#allocation8 + $0x138] sm:$0xff]  ;;  %1065 = vmatpush1.bf16.msra.mxu1 %v1064_v52 }
  0x9f   :  { %963 = vmatprep.subr.bf16.mxu0 %v962_v54  ;;  %v1066_v53 = vpack.c.bf16 %v611_v51, %v609_v50  ;;  %v608_v54 = vld [vmem:[#allocation8 + $0x120] sm:$0xff]  ;;  %v365_v51 = vld [vmem:[#allocation7 + $0x268] sm:$0xff]  ;;  %v367_v52 = vld [vmem:[#allocation7 + $0x278] sm:$0xff] }
  0xa0   :  { %v1068_v58 = vpack.c.bf16 %v610_v55, %v608_v54  ;;  %v976_v54 = vpack.c.bf16 %v362_v49, %v360_v48  ;;  %v401_v48 = vld [vmem:[#allocation7 + $0x388] sm:$0xff]  ;;  %v403_v49 = vld [vmem:[#allocation7 + $0x398] sm:$0xff] }
  0xa1   :  { %1067 = vmatprep.subr.bf16.mxu1 %v1066_v53 }
  0xa2   :  { %965 = vmatpush1.bf16.msra.mxu0 %v964_v57  ;;  %v615_v57 = vld [vmem:[#allocation8 + $0x158] sm:$0xff]  ;;  %1069 = vmatpush1.bf16.msra.mxu1 %v1068_v58  ;;  %v366_v58 = vld [vmem:[#allocation7 + $0x270] sm:$0xff] }
  0xa3   :  { %967 = vmatprep.subr.bf16.mxu0 %v966_v60  ;;  %v1070_v59 = vpack.c.bf16 %v615_v57, %v613_v56  ;;  %v612_v60 = vld [vmem:[#allocation8 + $0x140] sm:$0xff]  ;;  %v978_v56 = vpack.c.bf16 %v367_v52, %v365_v51  ;;  %v1014_v51 = vpack.c.bf16 %v403_v49, %v401_v48  ;;  %v726_v49 = vld [vmem:[#allocation10 + $0x28] sm:$0xff] }
  0xa4   :  { %v1072_v0 = vpack.c.bf16 %v614_v61, %v612_v60  ;;  %v364_v57 = vld [vmem:[#allocation7 + $0x260] sm:$0xff]  ;;  %v371_v60 = vld [vmem:[#allocation7 + $0x298] sm:$0xff] }
  0xa5   :  { %1071 = vmatprep.subr.bf16.mxu1 %v1070_v59  ;;  %v369_v59 = vld [vmem:[#allocation7 + $0x288] sm:$0xff]  ;;  %v980_v61 = vpack.c.bf16 %v366_v58, %v364_v57  ;;  %v400_v52 = vld [vmem:[#allocation7 + $0x380] sm:$0xff] }
  0xa6   :  { %1073 = vmatpush1.bf16.msra.mxu1 %v1072_v0  ;;  %v982_v62 = vpack.c.bf16 %v371_v60, %v369_v59  ;;  %v370_v0 = vld [vmem:[#allocation7 + $0x290] sm:$0xff]  ;;  %v404_v58 = vld [vmem:[#allocation7 + $0x3a0] sm:$0xff]  ;;  %v409_v60 = vld [vmem:[#allocation7 + $0x3c8] sm:$0xff] }
  0xa7   :  { %1075 = vmatprep.subr.bf16.mxu1 %v1074_v1  ;;  %v373_v1 = vld [vmem:[#allocation7 + $0x2a8] sm:$0xff]  ;;  %v984_v3 = vpack.c.bf16 %v370_v0, %v368_v63  ;;  %v406_v59 = vld [vmem:[#allocation7 + $0x3b0] sm:$0xff]  ;;  %v128_v63 = vsub.s32 2, %v1414_v11  ;;  %v725_v48 = vld [vmem:[#allocation10 + $0x20] sm:$0xff] }
  0xa8   :  { %v986_v4 = vpack.c.bf16 %v375_v2, %v373_v1  ;;  %v408_v1 = vld [vmem:[#allocation7 + $0x3c0] sm:$0xff]  ;;  %v410_v2 = vld [vmem:[#allocation7 + $0x3d0] sm:$0xff] }
  0xa9   :  { %v1024_v5 = vpack.c.bf16 %v410_v2, %v408_v1  ;;  %v129_v6 = vrot.slane %v1422_v21, %v128_v63  ;;  %v632_v21 = vld [vmem:[#allocation8 + $0x1e0] sm:$0xff]  ;;  %v748_v63 = vld [vmem:[#allocation10 + $0xd8] sm:$0xff]  ;;  %v731_v2 = vld [vmem:[#allocation10 + $0x50] sm:$0xff] }
  0xaa   :  { %1077 = vmatpush1.bf16.msra.mxu1 %v1076_v7  ;;  %v377_v7 = vld [vmem:[#allocation7 + $0x2c8] sm:$0xff] }
  0xab   :  { %1079 = vmatprep.subr.bf16.mxu1 %v1078_v8  ;;  %v379_v8 = vld [vmem:[#allocation7 + $0x2d8] sm:$0xff] }
  0xac   :  { %v990_v10 = vpack.c.bf16 %v379_v8, %v377_v7  ;;  %v412_v8 = vld [vmem:[#allocation7 + $0x3e0] sm:$0xff] }
  0xae   :  { %1081 = vmatpush1.bf16.msra.mxu1 %v1080_v14  ;;  %v381_v14 = vld [vmem:[#allocation7 + $0x2e8] sm:$0xff] }
  0xaf   :  { %1083 = vmatprep.subr.bf16.mxu1 %v1082_v15  ;;  %v383_v15 = vld [vmem:[#allocation7 + $0x2f8] sm:$0xff] }
  0xb0   :  { %v994_v17 = vpack.c.bf16 %v383_v15, %v381_v14  ;;  %v630_v14 = vld [vmem:[#allocation8 + $0x1d0] sm:$0xff] }
  0xb1   :  { %v1088_v15 = vpack.c.bf16 %v630_v14, %v628_v13  ;;  %v735_v14 = vld [vmem:[#allocation10 + $0x70] sm:$0xff] }
  0xb2   :  { %1085 = vmatpush1.bf16.msra.mxu1 %v1084_v23  ;;  %v385_v23 = vld [vmem:[#allocation7 + $0x308] sm:$0xff] }
  0xb3   :  { %1087 = vmatprep.subr.bf16.mxu1 %v1086_v24  ;;  %v387_v24 = vld [vmem:[#allocation7 + $0x318] sm:$0xff] }
  0xb6   :  { %1089 = vmatpush1.bf16.msra.mxu1 %v1088_v15  ;;  %v736_v15 = vld [vmem:[#allocation10 + $0x78] sm:$0xff] }
 0x13a   :  { %v208_v27 = vpop.f32.mrb[0].mxu1 }
 0x13b   :  { %v209_v28 = vadd.f32 %v208_v27, %v121_v25  ;;  %v210_v29 = vpop.f32.mrb[1].mxu1  ;;  %v996_v25 = vpack.c.bf16 %v382_v20, %v380_v19  ;;  %v384_v27 = vld [vmem:[#allocation7 + $0x300] sm:$0xff]  ;;  %v634_v20 = vld [vmem:[#allocation8 + $0x1f0] sm:$0xff] }
 0x13c   :  { %v211_v32 = vadd.f32 %v210_v29, %v125_v26  ;;  %v998_v26 = vpack.c.bf16 %v387_v24, %v385_v23  ;;  %v389_v29 = vld [vmem:[#allocation7 + $0x328] sm:$0xff]  ;;  %v1092_v23 = vpack.c.bf16 %v634_v20, %v632_v21  ;;  %v737_v24 = vld [vmem:[#allocation10 + $0x80] sm:$0xff] }
 0x13d   :  { %v284_v38 = vmax.f32 %v209_v28, 0.0  ;;  %v386_v28 = vld [vmem:[#allocation7 + $0x310] sm:$0xff] }
 0x13e   :  { %v285_v36 = vmax.f32 %v211_v32, 0.0  ;;  %v1000_v31 = vpack.c.bf16 %v386_v28, %v384_v27  ;;  %v1002_v32 = vpack.c.bf16 %v391_v30, %v389_v29 }
 0x140   :  { %492 = vmatprep.mubr.f32.mxu0 %v285_v36  ;;  %v395_v36 = vld [vmem:[#allocation7 + $0x358] sm:$0xff] }
 0x141   :  { %493 = vmatmul.mubr.f32.vlgmr.msra.gmra.mrb[0].mxu0 %v284_v38  ;;  %v1006_v38 = vpack.c.bf16 %v395_v36, %v393_v35  ;;  %v739_v35 = vld [vmem:[#allocation10 + $0x90] sm:$0xff]  ;;  %v740_v36 = vld [vmem:[#allocation10 + $0x98] sm:$0xff] }
 0x142   :  { %969 = vmatpush1.bf16.msra.mxu0 %v968_v37  ;;  %v1433_v46 = vpop.f32.mrb[2].mxu1  ;;  %v1004_v37 = vpack.c.bf16 %v390_v34, %v388_v33  ;;  %v722_v33 = vld [vmem:[#allocation10 + $0x8] sm:$0xff] }
 0x143   :  { %971 = vmatprep.subr.bf16.mxu0 %v970_v39  ;;  %v281_v50 = vpop.f32.mrb[3].mxu1  ;;  %v392_v39 = vld [vmem:[#allocation7 + $0x340] sm:$0xff]  ;;  %v280_v12 = vadd.f32 %v1433_v46, %v129_v6  ;;  %v416_v46 = vld [vmem:[%s1467_s4] sm:$0x3] }
 0x144   :  { %v282_v53 = vadd.f32 %v281_v50, %v133_v44  ;;  %v1008_v43 = vpack.c.bf16 %v394_v40, %v392_v39  ;;  %v1010_v44 = vpack.c.bf16 %v399_v42, %v397_v41  ;;  %v421_v27 = vrot.slane %v416_v46, %v1417_v18  ;;  %v723_v41 = vld [vmem:[#allocation10 + $0x10] sm:$0xff]  ;;  %v724_v42 = vld [vmem:[#allocation10 + $0x18] sm:$0xff] }
 0x145   :  { %v286_v11 = vmax.f32 %v280_v12, 0.0  ;;  %v425_v28 = vrot.slane %v416_v46, %v1425_v22  ;;  %v1098_v40 = vpack.c.bf16 %v740_v36, %v739_v35  ;;  %v751_v12 = vld [vmem:[#allocation10 + $0xf0] sm:$0xff] }
 0x146   :  { %973 = vmatpush1.bf16.msra.mxu0 %v972_v45  ;;  %v287_v55 = vmax.f32 %v282_v53, 0.0  ;;  %v396_v45 = vld [vmem:[#allocation7 + $0x360] sm:$0xff]  ;;  %v402_v53 = vld [vmem:[#allocation7 + $0x390] sm:$0xff] }
 0x147   :  { %975 = vmatprep.subr.bf16.mxu0 %v974_v47  ;;  %v398_v47 = vld [vmem:[#allocation7 + $0x370] sm:$0xff] }
 0x148   :  { %563 = vmatprep.mubr.f32.mxu0 %v287_v55  ;;  %v1012_v50 = vpack.c.bf16 %v398_v47, %v396_v45  ;;  %v407_v55 = vld [vmem:[#allocation7 + $0x3b8] sm:$0xff]  ;;  %v1100_v45 = vpack.c.bf16 %v724_v42, %v723_v41 }
 0x14a   :  { %977 = vmatpush1.bf16.msra.mxu0 %v976_v54  ;;  %v405_v54 = vld [vmem:[#allocation7 + $0x3a8] sm:$0xff] }
 0x14b   :  { %979 = vmatprep.subr.bf16.mxu0 %v978_v56  ;;  %v1016_v56 = vpack.c.bf16 %v402_v53, %v400_v52  ;;  %v1018_v57 = vpack.c.bf16 %v407_v55, %v405_v54  ;;  %v1104_v52 = vpack.c.bf16 %v726_v49, %v725_v48  ;;  %v727_v54 = vld [vmem:[#allocation10 + $0x30] sm:$0xff]  ;;  %v728_v55 = vld [vmem:[#allocation10 + $0x38] sm:$0xff] }
 0x14e   :  { %981 = vmatpush1.bf16.msra.mxu0 %v980_v61  ;;  %v411_v61 = vld [vmem:[#allocation7 + $0x3d8] sm:$0xff] }
 0x14f   :  { %983 = vmatprep.subr.bf16.mxu0 %v982_v62  ;;  %v1020_v62 = vpack.c.bf16 %v406_v59, %v404_v58  ;;  %v1022_v0 = vpack.c.bf16 %v411_v61, %v409_v60  ;;  %v1108_v58 = vpack.c.bf16 %v728_v55, %v727_v54  ;;  %v729_v60 = vld [vmem:[#allocation10 + $0x40] sm:$0xff]  ;;  %v730_v61 = vld [vmem:[#allocation10 + $0x48] sm:$0xff] }
 0x152   :  { %985 = vmatpush1.bf16.msra.mxu0 %v984_v3  ;;  %v413_v3 = vld [vmem:[#allocation7 + $0x3e8] sm:$0xff] }
 0x153   :  { %987 = vmatprep.subr.bf16.mxu0 %v986_v4  ;;  %v415_v4 = vld [vmem:[#allocation7 + $0x3f8] sm:$0xff] }
 0x154   :  { %v1026_v7 = vpack.c.bf16 %v415_v4, %v413_v3  ;;  %v732_v3 = vld [vmem:[#allocation10 + $0x58] sm:$0xff]  ;;  %v749_v4 = vld [vmem:[#allocation10 + $0xe0] sm:$0xff] }
 0x155   :  { %v1116_v6 = vpack.c.bf16 %v732_v3, %v731_v2 }
 0x156   :  { %989 = vmatpush1.bf16.msra.mxu0 %v988_v9  ;;  %v414_v9 = vld [vmem:[#allocation7 + $0x3f0] sm:$0xff] }
 0x157   :  { %991 = vmatprep.subr.bf16.mxu0 %v990_v10  ;;  %v1028_v10 = vpack.c.bf16 %v414_v9, %v412_v8  ;;  %v733_v8 = vld [vmem:[#allocation10 + $0x60] sm:$0xff]  ;;  %v734_v9 = vld [vmem:[#allocation10 + $0x68] sm:$0xff] }
 0x15a   :  { %993 = vmatpush1.bf16.msra.mxu0 %v992_v16  ;;  %v633_v16 = vld [vmem:[#allocation8 + $0x1e8] sm:$0xff] }
 0x15b   :  { %995 = vmatprep.subr.bf16.mxu0 %v994_v17  ;;  %v635_v17 = vld [vmem:[#allocation8 + $0x1f8] sm:$0xff] }
 0x15c   :  { %v1090_v19 = vpack.c.bf16 %v635_v17, %v633_v16  ;;  %v1124_v16 = vpack.c.bf16 %v736_v15, %v735_v14  ;;  %v636_v17 = vld [vmem:[%s1469_s6] sm:$0x3]  ;;  %s837_s6 = sshll.u32 %s1295_s13, 4  ;;  %s838_s6 = int_to_ptr.vmem [resolvable:$true] %s837_s6 }
 0x15d   :  { %v645_v21 = vrot.slane %v636_v17, %v1425_v22  ;;  %s1253_s1 = scalar_lea.vmem %s838_s6, 128  ;;  %p1258_p13 = scmp.lt.s32.totalorder %s838_s6, %s838_s6 }
 0x15e   :  { %997 = vmatpush1.bf16.msra.mxu0 %v996_v25  ;;  %1091 = vmatprep.subr.bf16.mxu1 %v1090_v19  ;;  %v738_v25 = vld [vmem:[#allocation10 + $0x88] sm:$0xff]  ;;  %v641_v19 = vrot.slane %v636_v17, %v1417_v18  ;;  %p1254_p12 = scmp.ne.s32.totalorder %s838_s6, %s1253_s1  ;;  %p1259_p0 = scmp.lt.s32.totalorder %s1253_s1, %s1253_s1 }
 0x15f   :  { %999 = vmatprep.subr.bf16.mxu0 %v998_v26  ;;  %1093 = vmatpush1.bf16.msra.mxu1 %v1092_v23  ;;  %v1094_v26 = vpack.c.bf16 %v738_v25, %v737_v24 }
 0x160   :  { %p1260_p1 = por %p1259_p0, %p1258_p13 }
 0x161   :  { %1095 = vmatprep.subr.bf16.mxu1 %v1094_v26 }
 0x162   :  { %1001 = vmatpush1.bf16.msra.mxu0 %v1000_v31  ;;  %p1261_p2 = pnand %p1260_p1, %p1254_p12 }
 0x163   :  { %1003 = vmatprep.subr.bf16.mxu0 %v1002_v32  ;;  %v721_v32 = vld [vmem:[#allocation10] sm:$0xff] }
 0x166   :  { %1005 = vmatpush1.bf16.msra.mxu0 %v1004_v37 }
 0x167   :  { %1007 = vmatprep.subr.bf16.mxu0 %v1006_v38  ;;  %v1096_v38 = vpack.c.bf16 %v722_v33, %v721_v32 }
 0x16a   :  { %1009 = vmatpush1.bf16.msra.mxu0 %v1008_v43  ;;  %v741_v43 = vld [vmem:[#allocation10 + $0xa0] sm:$0xff] }
 0x16b   :  { %1011 = vmatprep.subr.bf16.mxu0 %v1010_v44  ;;  %v742_v44 = vld [vmem:[#allocation10 + $0xa8] sm:$0xff] }
 0x16c   :  { %v1102_v47 = vpack.c.bf16 %v742_v44, %v741_v43 }
 0x16e   :  { %1013 = vmatpush1.bf16.msra.mxu0 %v1012_v50  ;;  %v743_v50 = vld [vmem:[#allocation10 + $0xb0] sm:$0xff] }
 0x16f   :  { %1015 = vmatprep.subr.bf16.mxu0 %v1014_v51  ;;  %v744_v51 = vld [vmem:[#allocation10 + $0xb8] sm:$0xff] }
 0x170   :  { %v1106_v53 = vpack.c.bf16 %v744_v51, %v743_v50 }
 0x172   :  { %1017 = vmatpush1.bf16.msra.mxu0 %v1016_v56  ;;  %v745_v56 = vld [vmem:[#allocation10 + $0xc0] sm:$0xff] }
 0x173   :  { %1019 = vmatprep.subr.bf16.mxu0 %v1018_v57  ;;  %v746_v57 = vld [vmem:[#allocation10 + $0xc8] sm:$0xff] }
 0x174   :  { %v1110_v59 = vpack.c.bf16 %v746_v57, %v745_v56 }
 0x176   :  { %1021 = vmatpush1.bf16.msra.mxu0 %v1020_v62  ;;  %v747_v62 = vld [vmem:[#allocation10 + $0xd0] sm:$0xff] }
 0x177   :  { %1023 = vmatprep.subr.bf16.mxu0 %v1022_v0  ;;  %v1112_v0 = vpack.c.bf16 %v730_v61, %v729_v60  ;;  %v1114_v1 = vpack.c.bf16 %v748_v63, %v747_v62 }
 0x17a   :  { %1025 = vmatpush1.bf16.msra.mxu0 %v1024_v5  ;;  %v750_v5 = vld [vmem:[#allocation10 + $0xe8] sm:$0xff] }
 0x17b   :  { %1027 = vmatprep.subr.bf16.mxu0 %v1026_v7  ;;  %v1118_v7 = vpack.c.bf16 %v750_v5, %v749_v4 }
 0x17e   :  { %1029 = vmatpush1.bf16.msra.mxu0 %v1028_v10  ;;  %v1120_v10 = vpack.c.bf16 %v734_v9, %v733_v8 }
 0x181   :  { %564 = vmatmul.mubr.f32.vlgmr.msra.gmra.mrb[0].mxu0 %v286_v11  ;;  %v752_v11 = vld [vmem:[#allocation10 + $0xf8] sm:$0xff] }
 0x182   :  { %v1122_v13 = vpack.c.bf16 %v752_v11, %v751_v12 }
 0x254   :  { %v565_v29 = vpop.f32.mrb[0].mxu0 }
 0x255   :  { %v1126_v30 = vadd.f32 %v565_v29, %v421_v27  ;;  %v567_v31 = vpop.f32.mrb[1].mxu0 }
 0x256   :  { %v1127_v34 = vadd.f32 %v567_v31, %v425_v28  ;;  %v850_v28 = vld [vmem:[%s1471_s8] ss:$0 sm:$0xff] }
 0x257   :  { %v570_v39 = vmax.f32 %v1126_v30, 0.0 }
 0x258   :  { %v571_v37 = vmax.f32 %v1127_v34, 0.0 }
 0x25a   :  { %712 = vmatprep.mubr.f32.mxu1 %v571_v37 }
 0x25b   :  { %713 = vmatmul.mubr.f32.vlgmr.msra.gmra.mrb[4].mxu1 %v570_v39 }
 0x25c   :  { %1097 = vmatpush3.bf16.msra.mxu1 %v1096_v38 }
 0x25d   :  { %1099 = vmatprep.subr.bf16.mxu1 %v1098_v40 }
 0x260   :  { %1101 = vmatpush3.bf16.msra.mxu1 %v1100_v45 }
 0x261   :  { %1103 = vmatprep.subr.bf16.mxu1 %v1102_v47 }
 0x264   :  { %1105 = vmatpush3.bf16.msra.mxu1 %v1104_v52 }
 0x265   :  { %1107 = vmatprep.subr.bf16.mxu1 %v1106_v53 }
 0x268   :  { %1109 = vmatpush3.bf16.msra.mxu1 %v1108_v58 }
 0x269   :  { %1111 = vmatprep.subr.bf16.mxu1 %v1110_v59 }
 0x26c   :  { %1113 = vmatpush3.bf16.msra.mxu1 %v1112_v0 }
 0x26d   :  { %1115 = vmatprep.subr.bf16.mxu1 %v1114_v1 }
 0x270   :  { %1117 = vmatpush3.bf16.msra.mxu1 %v1116_v6 }
 0x271   :  { %1119 = vmatprep.subr.bf16.mxu1 %v1118_v7 }
 0x274   :  { %1121 = vmatpush3.bf16.msra.mxu1 %v1120_v10 }
 0x275   :  { %1123 = vmatprep.subr.bf16.mxu1 %v1122_v13 }
 0x278   :  { %1125 = vmatpush3.bf16.msra.mxu1 %v1124_v16 }
 0x32e   :  { %v714_v20 = vpop.f32.mrb[4].mxu1 }
 0x32f   :  { %v715_v23 = vadd.f32 %v714_v20, %v641_v19  ;;  %v716_v24 = vpop.f32.mrb[5].mxu1 }
 0x330   :  { %v717_v25 = vadd.f32 %v716_v24, %v645_v21 }
 0x331   :  { %v719_v46 = vmax.f32 %v715_v23, 0.0 }
 0x332   :  { %v720_v26 = vmax.f32 %v717_v25, 0.0 }
 0x334   :  { %824 = vmatprep.mubr.f32.mxu1 %v720_v26 }
 0x335   :  { %825 = vmatmul.mubr.f32.vlgmr.msra.gmra.mrb[6].mxu1 %v719_v46 }
 0x408   :  { %v883_v27 = vpop.f32.mrb[6].mxu1 }
 0x409   :  { %v884_v29 = vpop.f32.mrb[7].mxu1 }
 0x40a   :  { %v885_v30 = vadd.f32 %v884_v29, %v883_v27 }
 0x40c   :  { %v827_v18 = vadd.f32 %v885_v30, %v850_v28 }
 0x40e   :  { %830 = vst [vmem:[#allocation11] sm:$0xff] %v827_v18 }
 0x40f   :  { %1264 = shalt.err (!%p1261_p2)
}
 0x410   :  { %s1265_s17 = scalar_lea.hbm %s1472_s9, 128 }
 0x411   :  { %p1266_p3 = scmp.ne.s32.totalorder %s1472_s9, %s1265_s17  ;;  %p1269_p4 = scmp.lt.u32.totalorder %s1265_s17, %s1472_s9 }
 0x413   :  { %p1271_p5 = pnand %p1269_p4, %p1266_p3 }
 0x415   :  { %1274 = shalt.err (!%p1271_p5)
}
 0x416   :  { %840 = dma.vmem_to_hbm [thread:$0]  %s838_s6, 128, %s1472_s9, [#allocation4]  }
 0x417   :  { %1281 = dma.done.wait [#allocation4], 128  }
 0x418   :  { %1282 = vsyncadd [#allocation4], 4294967168 }
 0x419   :  { %844 = vsyncpa [#allocation3], 1 }
 0x41a   :  { %845 = vsyncpa [#allocation6], 1 }
 0x41b   :  { %846 = vsyncpa [#allocation9], 1 }
 0x41c   :  { %847 = vsyncpa [#allocation4], 1 }

</bundles_post_ra>
